<compile_context>
chip_gen: v6e
topology: v6e:2x2x1
jax: 0.10.0
libtpu: 0.0.40
codegen_flags: <defaults>
</compile_context>

<pallas_src>
import jax
import jax.numpy as jnp
import numpy as np
from jax.experimental import pallas as pl
from jax.experimental.pallas import tpu as pltpu


def _post_process_kernel(logits_ref, qtab_ref, tbl_ref, scale_ref, mt_ref,
                         scores_ref, labels_ref, boxes_ref, idx_ref,
                         work_ref, taken_ref, sel_val_ref, sel_idx_ref,
                         sel_q_ref):
    qc = logits_ref.shape[-1]              # Q * C (flattened query x class)
    q = tbl_ref.shape[-1]                  # number of queries
    k = scores_ref.shape[-1]               # top-K

    # f32 working copy of the flattened logits for this image.
    work_ref[...] = logits_ref[0].astype(jnp.float32)          # (1, QC)
    taken_ref[...] = jnp.zeros((1, qc), jnp.int32)
    sel_val_ref[...] = jnp.zeros((1, k), jnp.float32)
    sel_idx_ref[...] = jnp.zeros((1, k), jnp.int32)
    sel_q_ref[...] = jnp.zeros((1, k), jnp.int32)

    lane_iota = jax.lax.broadcasted_iota(jnp.int32, (1, qc), 1)
    k_iota = jax.lax.broadcasted_iota(jnp.int32, (1, k), 1)
    neg_inf = jnp.float32(-jnp.inf)
    qtab = qtab_ref[...]                                        # (1, QC) i32

    # --- K-pass masked max selection; ties resolved to the lowest flat index,
    # matching torch.topk / jax.lax.top_k ordering.  Ranking uses raw logits
    # (sigmoid is monotonic) so no transcendental is spent on losers.
    def select_step(step, carry):
        vals = work_ref[...]                                    # (1, QC)
        free = taken_ref[...] == 0
        masked = jnp.where(free, vals, neg_inf)
        m = jnp.max(masked, axis=1, keepdims=True)              # (1, 1)
        hitmask = (masked == m) & free
        idx = jnp.min(jnp.where(hitmask, lane_iota, qc),
                      axis=1, keepdims=True)                    # (1, 1) i32
        # query index of the selected element: qtab (= flat // C) is monotone
        # in the flat index, so min-over-hits equals qtab at the lowest hit.
        qsel = jnp.min(jnp.where(hitmask, qtab, q),
                       axis=1, keepdims=True)                   # (1, 1) i32
        hit = k_iota == step
        sel_val_ref[...] = jnp.where(hit, m, sel_val_ref[...])
        sel_idx_ref[...] = jnp.where(hit, idx, sel_idx_ref[...])
        sel_q_ref[...] = jnp.where(hit, qsel, sel_q_ref[...])
        taken_ref[...] = jnp.where(lane_iota == idx,
                                   jnp.int32(1), taken_ref[...])
        return carry

    jax.lax.fori_loop(0, k, select_step, 0)

    # sigmoid only on the K selected logits.
    scores = jax.nn.sigmoid(sel_val_ref[...])                   # (1, K)
    box_q = sel_q_ref[...]                                      # (1, K) i32

    # gather (cx,cy,w,h,label) at the selected query indices: one MXU pass.
    q_iota = jax.lax.broadcasted_iota(jnp.int32, (q, k), 0)
    onehot = (q_iota == box_q).astype(jnp.float32)              # (Q, K)
    gathered = jnp.dot(tbl_ref[0], onehot,
                       preferred_element_type=jnp.float32)      # (8, K)

    # cxcywh -> xyxy with the per-image scale folded into the (4,8) matrix.
    mt_scaled = mt_ref[...] * scale_ref[0]                      # (4,8)*(4,1)
    boxes = jnp.dot(mt_scaled, gathered,
                    preferred_element_type=jnp.float32)         # (4, K)

    scores_ref[...] = scores.reshape(1, 1, k)
    labels_ref[...] = gathered[4:5, :].reshape(1, 1, k)
    boxes_ref[...] = boxes.reshape(1, 4, k)
    idx_ref[...] = sel_idx_ref[...].reshape(1, 1, k)


def ov_post_process(outputs, target_sizes, *, num_queries=300, topk=300):
    out_logits = outputs['pred_logits']     # (B, Q, C) float
    out_bbox = outputs['pred_boxes']        # (B, Q, 4) float, cxcywh
    select_id = outputs['select_id']
    if isinstance(select_id, int):
        select_id = [select_id]

    B, Q, C = out_logits.shape
    assert out_logits.shape[0] == target_sizes.shape[0]
    assert target_sizes.shape[1] == 2
    QC = Q * C
    K = topk
    assert K <= QC

    # glue: per-query label table (mirrors labels[:, i*nq:(i+1)*nq] = c)
    labelq_np = np.zeros((1, Q), dtype=np.float32)
    for ind, c in enumerate(select_id):
        lo = ind * num_queries
        hi = min((ind + 1) * num_queries, Q)
        labelq_np[0, lo:hi] = float(c)

    # glue: flat-index -> query-index table (avoids in-kernel integer divide)
    qtab = jnp.asarray((np.arange(QC, dtype=np.int32) // C).reshape(1, QC))

    # glue: scale factors [w, h, w, h] as a per-image column (B, 4, 1)
    img_h = target_sizes[:, 0].astype(jnp.float32)
    img_w = target_sizes[:, 1].astype(jnp.float32)
    scale_col = jnp.stack([img_w, img_h, img_w, img_h], axis=1)[:, :, None]

    # glue: cxcywh -> xyxy as a left-multiply matrix on column vectors, padded
    # to 8 input lanes (cols 4..7 zero so the label row is ignored).
    mt_np = np.zeros((4, 8), dtype=np.float32)
    mt_np[:, 0:4] = np.array([[1.0, 0.0, -0.5, 0.0],
                              [0.0, 1.0, 0.0, -0.5],
                              [1.0, 0.0, 0.5, 0.0],
                              [0.0, 1.0, 0.0, 0.5]], dtype=np.float32)
    m_t = jnp.asarray(mt_np)

    # glue: lane-major flattened logits, and the (8, Q) gather table per image:
    # rows 0..3 = bbox^T (cx,cy,w,h), row 4 = per-query label, rows 5..7 = 0.
    logits_row = out_logits.reshape(B, 1, QC).astype(jnp.float32)
    bbox_t = jnp.transpose(out_bbox.astype(jnp.float32), (0, 2, 1))   # (B,4,Q)
    label_row = jnp.broadcast_to(jnp.asarray(labelq_np)[None], (B, 1, Q))
    tbl8 = jnp.concatenate([bbox_t, label_row,
                            jnp.zeros((B, 3, Q), jnp.float32)], axis=1)

    cost = pl.CostEstimate(
        flops=int(B * (12 * K * QC + 2 * 8 * Q * K + 2 * 8 * 4 * K)),
        transcendentals=int(B * K),
        bytes_accessed=int(B * (2 * QC * 4 + 8 * Q * 4 + 4 * 4 + 7 * K * 4)
                           + 4 * 8 * 4))

    out_shapes = (
        jax.ShapeDtypeStruct((B, 1, K), jnp.float32),   # scores
        jax.ShapeDtypeStruct((B, 1, K), jnp.float32),   # labels (float, as torch)
        jax.ShapeDtypeStruct((B, 4, K), jnp.float32),   # boxes, xyxy on rows
        jax.ShapeDtypeStruct((B, 1, K), jnp.int32),     # topk_indexes (int32; torch int64)
    )

    # TODO(synk): for B == 1 on v7x, add a second "parallel" grid axis over QC
    # tiles with a two-stage (local top-K + merge) selection so both
    # TensorCores get work.
    scores, labels, boxes4k, topk_idx = pl.pallas_call(
        _post_process_kernel,
        out_shape=out_shapes,
        grid=(B,),
        in_specs=[
            pl.BlockSpec((1, 1, QC), lambda b: (b, 0, 0)),   # logits (row view)
            pl.BlockSpec((1, QC), lambda b: (0, 0)),         # flat -> query idx
            pl.BlockSpec((1, 8, Q), lambda b: (b, 0, 0)),    # gather table
            pl.BlockSpec((1, 4, 1), lambda b: (b, 0, 0)),    # scale column
            pl.BlockSpec((4, 8), lambda b: (0, 0)),          # cxcywh->xyxy mat
        ],
        out_specs=(
            pl.BlockSpec((1, 1, K), lambda b: (b, 0, 0)),
            pl.BlockSpec((1, 1, K), lambda b: (b, 0, 0)),
            pl.BlockSpec((1, 4, K), lambda b: (b, 0, 0)),
            pl.BlockSpec((1, 1, K), lambda b: (b, 0, 0)),
        ),
        scratch_shapes=[
            pltpu.VMEM((1, QC), jnp.float32),   # working logits copy
            pltpu.VMEM((1, QC), jnp.int32),     # taken mask
            pltpu.VMEM((1, K), jnp.float32),    # selected logits
            pltpu.VMEM((1, K), jnp.int32),      # selected flat indices
            pltpu.VMEM((1, K), jnp.int32),      # selected query indices
        ],
        compiler_params=pltpu.CompilerParams(
            dimension_semantics=("parallel",),
            vmem_limit_bytes=32 * 1024 * 1024),
        cost_estimate=cost,
    )(logits_row, qtab, tbl8, scale_col, m_t)

    scores = scores[:, 0, :]
    labels = labels[:, 0, :]
    topk_idx = topk_idx[:, 0, :]
    boxes = jnp.transpose(boxes4k, (0, 2, 1))       # (B, K, 4)
    results = [{'scores': s, 'labels': l, 'boxes': b}
               for s, l, b in zip(scores, labels, boxes)]
    return results, topk_idx


def _reference(outputs, target_sizes, *, num_queries, topk):
    """Pure-JAX reference mirroring the PyTorch module."""
    out_logits = outputs['pred_logits']
    out_bbox = outputs['pred_boxes']
    select_id = outputs['select_id']
    if isinstance(select_id, int):
        select_id = [select_id]
    B, Q, C = out_logits.shape
    prob = jax.nn.sigmoid(out_logits.astype(jnp.float32))
    scores, topk_indexes = jax.lax.top_k(prob.reshape(B, -1), topk)
    topk_boxes = topk_indexes // C
    labelq = np.zeros((Q * C,), dtype=np.float32)
    for ind, c in enumerate(select_id):
        labelq[ind * num_queries:(ind + 1) * num_queries] = float(c)
    labels = jnp.asarray(labelq)[topk_boxes]
    cx, cy, w, h = (out_bbox[..., 0], out_bbox[..., 1],
                    out_bbox[..., 2], out_bbox[..., 3])
    xyxy = jnp.stack([cx - 0.5 * w, cy - 0.5 * h,
                      cx + 0.5 * w, cy + 0.5 * h], axis=-1)
    boxes = jnp.take_along_axis(xyxy, topk_boxes[..., None], axis=1)
    img_h = target_sizes[:, 0].astype(jnp.float32)
    img_w = target_sizes[:, 1].astype(jnp.float32)
    scale = jnp.stack([img_w, img_h, img_w, img_h], axis=1)
    boxes = boxes * scale[:, None, :]
    return scores, labels, boxes, topk_indexes


if __name__ == "__main__":
    key = jax.random.PRNGKey(0)
    B = 2
    num_queries = 8          # small stand-in for the module's 300
    select_id = [3, 7]
    Q = num_queries * len(select_id)   # 16 queries total
    C = 4                    # classes per query
    K = 8                    # small stand-in for top-300

    k1, k2 = jax.random.split(key)
    logits = jax.random.normal(k1, (B, Q, C), dtype=jnp.float32)
    boxes_cxcywh = jax.random.uniform(k2, (B, Q, 4), dtype=jnp.float32,
                                      minval=0.1, maxval=0.9)
    target_sizes = jnp.array([[480.0, 640.0], [300.0, 400.0]],
                             dtype=jnp.float32)
    outputs = {'pred_logits': logits, 'pred_boxes': boxes_cxcywh,
               'select_id': select_id}

    results, topk_idx = ov_post_process(outputs, target_sizes,
                                        num_queries=num_queries, topk=K)
    jax.block_until_ready(topk_idx)
    for r in results:
        jax.block_until_ready(r['boxes'])

    # correctness check against a pure-JAX reference
    ref_scores, ref_labels, ref_boxes, ref_idx = _reference(
        outputs, target_sizes, num_queries=num_queries, topk=K)
    got_scores = jnp.stack([r['scores'] for r in results])
    got_labels = jnp.stack([r['labels'] for r in results])
    got_boxes = jnp.stack([r['boxes'] for r in results])

    np.testing.assert_array_equal(np.asarray(topk_idx),
                                  np.asarray(ref_idx).astype(np.int32))
    np.testing.assert_allclose(np.asarray(got_scores), np.asarray(ref_scores),
                               rtol=1e-5, atol=1e-5)
    np.testing.assert_allclose(np.asarray(got_labels), np.asarray(ref_labels),
                               rtol=0, atol=1e-4)
    np.testing.assert_allclose(np.asarray(got_boxes), np.asarray(ref_boxes),
                               rtol=1e-4, atol=1e-2)

    print("KERNEL_OK")
</pallas_src>

<mosaic_0001>
module attributes {stable_mosaic.version = 11 : i64} {
  func.func @_post_process_kernel(%arg0: i32, %arg1: memref<1x1x64xf32, #tpu.memory_space<vmem>>, %arg2: memref<1x64xi32, #tpu.memory_space<vmem>>, %arg3: memref<1x8x16xf32, #tpu.memory_space<vmem>>, %arg4: memref<1x4x1xf32, #tpu.memory_space<vmem>>, %arg5: memref<4x8xf32, #tpu.memory_space<vmem>>, %arg6: memref<1x1x8xf32, #tpu.memory_space<vmem>>, %arg7: memref<1x1x8xf32, #tpu.memory_space<vmem>>, %arg8: memref<1x4x8xf32, #tpu.memory_space<vmem>>, %arg9: memref<1x1x8xi32, #tpu.memory_space<vmem>>, %arg10: memref<1x64xf32, #tpu.memory_space<vmem>>, %arg11: memref<1x64xi32, #tpu.memory_space<vmem>>, %arg12: memref<1x8xf32, #tpu.memory_space<vmem>>, %arg13: memref<1x8xi32, #tpu.memory_space<vmem>>, %arg14: memref<1x8xi32, #tpu.memory_space<vmem>>) attributes {dimension_semantics = [#tpu.dimension_semantics<parallel>], iteration_bounds = array<i64: 2>, scalar_prefetch = 0 : i64, scratch_operands = 5 : i64, tpu.core_type = #tpu.core_type<tc>, window_params = [{transform_indices = @transform_0, window_bounds = array<i64: 1, 1, 64>}, {pipeline_mode = #tpu.pipeline_mode<synchronous>, transform_indices = @transform_1, window_bounds = array<i64: 1, 64>}, {transform_indices = @transform_2, window_bounds = array<i64: 1, 8, 16>}, {transform_indices = @transform_3, window_bounds = array<i64: 1, 4, 1>}, {pipeline_mode = #tpu.pipeline_mode<synchronous>, transform_indices = @transform_4, window_bounds = array<i64: 4, 8>}, {transform_indices = @transform_5, window_bounds = array<i64: 1, 1, 8>}, {transform_indices = @transform_6, window_bounds = array<i64: 1, 1, 8>}, {transform_indices = @transform_7, window_bounds = array<i64: 1, 4, 8>}, {transform_indices = @transform_8, window_bounds = array<i64: 1, 1, 8>}]} {
    %c0 = arith.constant 0 : index
    %c0_0 = arith.constant 0 : index
    %c0_1 = arith.constant 0 : index
    %0 = vector.load %arg1[%c0, %c0_0, %c0_1] : memref<1x1x64xf32, #tpu.memory_space<vmem>>, vector<1x1x64xf32>
    %1 = vector.shape_cast %0 : vector<1x1x64xf32> to vector<1x64xf32>
    %c0_2 = arith.constant 0 : index
    %c0_3 = arith.constant 0 : index
    %2 = vector.load %arg10[%c0_2, %c0_3] : memref<1x64xf32, #tpu.memory_space<vmem>>, vector<1x64xf32>
    tpu.vector_store %arg10[%c0_2, %c0_3], %1 {strides = array<i32>} : memref<1x64xf32, #tpu.memory_space<vmem>>, vector<1x64xf32>,
    %c0_i32 = arith.constant 0 : i32
    %3 = vector.broadcast %c0_i32 : i32 to vector<1x64xi32>
    %c0_4 = arith.constant 0 : index
    %c0_5 = arith.constant 0 : index
    %4 = vector.load %arg11[%c0_4, %c0_5] : memref<1x64xi32, #tpu.memory_space<vmem>>, vector<1x64xi32>
    tpu.vector_store %arg11[%c0_4, %c0_5], %3 {strides = array<i32>} : memref<1x64xi32, #tpu.memory_space<vmem>>, vector<1x64xi32>,
    %cst = arith.constant 0.000000e+00 : f32
    %5 = vector.broadcast %cst : f32 to vector<1x8xf32>
    %c0_6 = arith.constant 0 : index
    %c0_7 = arith.constant 0 : index
    %6 = vector.load %arg12[%c0_6, %c0_7] : memref<1x8xf32, #tpu.memory_space<vmem>>, vector<1x8xf32>
    tpu.vector_store %arg12[%c0_6, %c0_7], %5 {strides = array<i32>} : memref<1x8xf32, #tpu.memory_space<vmem>>, vector<1x8xf32>,
    %c0_i32_8 = arith.constant 0 : i32
    %7 = vector.broadcast %c0_i32_8 : i32 to vector<1x8xi32>
    %c0_9 = arith.constant 0 : index
    %c0_10 = arith.constant 0 : index
    %8 = vector.load %arg13[%c0_9, %c0_10] : memref<1x8xi32, #tpu.memory_space<vmem>>, vector<1x8xi32>
    tpu.vector_store %arg13[%c0_9, %c0_10], %7 {strides = array<i32>} : memref<1x8xi32, #tpu.memory_space<vmem>>, vector<1x8xi32>,
    %c0_i32_11 = arith.constant 0 : i32
    %9 = vector.broadcast %c0_i32_11 : i32 to vector<1x8xi32>
    %c0_12 = arith.constant 0 : index
    %c0_13 = arith.constant 0 : index
    %10 = vector.load %arg14[%c0_12, %c0_13] : memref<1x8xi32, #tpu.memory_space<vmem>>, vector<1x8xi32>
    tpu.vector_store %arg14[%c0_12, %c0_13], %9 {strides = array<i32>} : memref<1x8xi32, #tpu.memory_space<vmem>>, vector<1x8xi32>,
    %11 = tpu.iota {dimensions = array<i32: 1>} : vector<1x64xi32>
    %12 = tpu.iota {dimensions = array<i32: 1>} : vector<1x8xi32>
    %c0_14 = arith.constant 0 : index
    %c0_15 = arith.constant 0 : index
    %13 = vector.load %arg2[%c0_14, %c0_15] : memref<1x64xi32, #tpu.memory_space<vmem>>, vector<1x64xi32>
    %cst_16 = arith.constant 0xFF800000 : f32
    %c0_i32_17 = arith.constant 0 : i32
    %c8_i32 = arith.constant 8 : i32
    %14 = arith.addi %c0_i32_17, %c8_i32 : i32
    %c1_i32 = arith.constant 1 : i32
    scf.for %arg15 = %c0_i32_17 to %14 step %c1_i32  : i32 {
      %c0_48 = arith.constant 0 : index
      %c0_49 = arith.constant 0 : index
      %46 = vector.load %arg10[%c0_48, %c0_49] : memref<1x64xf32, #tpu.memory_space<vmem>>, vector<1x64xf32>
      %c0_50 = arith.constant 0 : index
      %c0_51 = arith.constant 0 : index
      %47 = vector.load %arg11[%c0_50, %c0_51] : memref<1x64xi32, #tpu.memory_space<vmem>>, vector<1x64xi32>
      %c0_i32_52 = arith.constant 0 : i32
      %48 = vector.broadcast %c0_i32_52 : i32 to vector<1x64xi32>
      %49 = arith.cmpi eq, %47, %48 : vector<1x64xi32>
      %50 = vector.broadcast %cst_16 : f32 to vector<1x64xf32>
      %51 = arith.select %49, %46, %50 : vector<1x64xi1>, vector<1x64xf32>
      %cst_53 = arith.constant dense<0xFF800000> : vector<1xf32>
      %52 = vector.multi_reduction <maximumf>, %51, %cst_53 [1] : vector<1x64xf32> to vector<1xf32>
      %53 = vector.shape_cast %52 : vector<1xf32> to vector<1x1xf32>
      %54 = vector.broadcast %53 : vector<1x1xf32> to vector<1x64xf32>
      %55 = arith.cmpf oeq, %51, %54 : vector<1x64xf32>
      %56 = arith.andi %55, %49 : vector<1x64xi1>
      %c64_i32 = arith.constant 64 : i32
      %57 = vector.broadcast %c64_i32 : i32 to vector<1x64xi32>
      %58 = arith.select %56, %11, %57 : vector<1x64xi1>, vector<1x64xi32>
      %cst_54 = arith.constant dense<2147483647> : vector<1xi32>
      %59 = vector.multi_reduction <minsi>, %58, %cst_54 [1] : vector<1x64xi32> to vector<1xi32>
      %60 = vector.shape_cast %59 : vector<1xi32> to vector<1x1xi32>
      %c16_i32 = arith.constant 16 : i32
      %61 = vector.broadcast %c16_i32 : i32 to vector<1x64xi32>
      %62 = arith.select %56, %13, %61 : vector<1x64xi1>, vector<1x64xi32>
      %cst_55 = arith.constant dense<2147483647> : vector<1xi32>
      %63 = vector.multi_reduction <minsi>, %62, %cst_55 [1] : vector<1x64xi32> to vector<1xi32>
      %64 = vector.shape_cast %63 : vector<1xi32> to vector<1x1xi32>
      %65 = vector.broadcast %arg15 : i32 to vector<1x8xi32>
      %66 = arith.cmpi eq, %12, %65 : vector<1x8xi32>
      %c0_56 = arith.constant 0 : index
      %c0_57 = arith.constant 0 : index
      %67 = vector.load %arg12[%c0_56, %c0_57] : memref<1x8xf32, #tpu.memory_space<vmem>>, vector<1x8xf32>
      %68 = vector.shape_cast %53 : vector<1x1xf32> to vector<1x1xf32>
      %69 = vector.broadcast %68 : vector<1x1xf32> to vector<1x8xf32>
      %70 = arith.select %66, %69, %67 : vector<1x8xi1>, vector<1x8xf32>
      %c0_58 = arith.constant 0 : index
      %c0_59 = arith.constant 0 : index
      %71 = vector.load %arg12[%c0_58, %c0_59] : memref<1x8xf32, #tpu.memory_space<vmem>>, vector<1x8xf32>
      tpu.vector_store %arg12[%c0_58, %c0_59], %70 {strides = array<i32>} : memref<1x8xf32, #tpu.memory_space<vmem>>, vector<1x8xf32>,
      %c0_60 = arith.constant 0 : index
      %c0_61 = arith.constant 0 : index
      %72 = vector.load %arg13[%c0_60, %c0_61] : memref<1x8xi32, #tpu.memory_space<vmem>>, vector<1x8xi32>
      %73 = vector.shape_cast %60 : vector<1x1xi32> to vector<1x1xi32>
      %74 = vector.broadcast %73 : vector<1x1xi32> to vector<1x8xi32>
      %75 = arith.select %66, %74, %72 : vector<1x8xi1>, vector<1x8xi32>
      %c0_62 = arith.constant 0 : index
      %c0_63 = arith.constant 0 : index
      %76 = vector.load %arg13[%c0_62, %c0_63] : memref<1x8xi32, #tpu.memory_space<vmem>>, vector<1x8xi32>
      tpu.vector_store %arg13[%c0_62, %c0_63], %75 {strides = array<i32>} : memref<1x8xi32, #tpu.memory_space<vmem>>, vector<1x8xi32>,
      %c0_64 = arith.constant 0 : index
      %c0_65 = arith.constant 0 : index
      %77 = vector.load %arg14[%c0_64, %c0_65] : memref<1x8xi32, #tpu.memory_space<vmem>>, vector<1x8xi32>
      %78 = vector.shape_cast %64 : vector<1x1xi32> to vector<1x1xi32>
      %79 = vector.broadcast %78 : vector<1x1xi32> to vector<1x8xi32>
      %80 = arith.select %66, %79, %77 : vector<1x8xi1>, vector<1x8xi32>
      %c0_66 = arith.constant 0 : index
      %c0_67 = arith.constant 0 : index
      %81 = vector.load %arg14[%c0_66, %c0_67] : memref<1x8xi32, #tpu.memory_space<vmem>>, vector<1x8xi32>
      tpu.vector_store %arg14[%c0_66, %c0_67], %80 {strides = array<i32>} : memref<1x8xi32, #tpu.memory_space<vmem>>, vector<1x8xi32>,
      %82 = vector.broadcast %60 : vector<1x1xi32> to vector<1x64xi32>
      %83 = arith.cmpi eq, %11, %82 : vector<1x64xi32>
      %c0_68 = arith.constant 0 : index
      %c0_69 = arith.constant 0 : index
      %84 = vector.load %arg11[%c0_68, %c0_69] : memref<1x64xi32, #tpu.memory_space<vmem>>, vector<1x64xi32>
      %c1_i32_70 = arith.constant 1 : i32
      %85 = vector.broadcast %c1_i32_70 : i32 to vector<1x64xi32>
      %86 = arith.select %83, %85, %84 : vector<1x64xi1>, vector<1x64xi32>
      %c0_71 = arith.constant 0 : index
      %c0_72 = arith.constant 0 : index
      %87 = vector.load %arg11[%c0_71, %c0_72] : memref<1x64xi32, #tpu.memory_space<vmem>>, vector<1x64xi32>
      tpu.vector_store %arg11[%c0_71, %c0_72], %86 {strides = array<i32>} : memref<1x64xi32, #tpu.memory_space<vmem>>, vector<1x64xi32>,
    }
    %c8_i32_18 = arith.constant 8 : i32
    %c0_19 = arith.constant 0 : index
    %c0_20 = arith.constant 0 : index
    %15 = vector.load %arg12[%c0_19, %c0_20] : memref<1x8xf32, #tpu.memory_space<vmem>>, vector<1x8xf32>
    %16 = arith.negf %15 : vector<1x8xf32>
    %17 = math.exp %16 : vector<1x8xf32>
    %cst_21 = arith.constant 1.000000e+00 : f32
    %18 = vector.broadcast %cst_21 : f32 to vector<1x8xf32>
    %19 = arith.addf %18, %17 : vector<1x8xf32>
    %20 = arith.divf %18, %19 : vector<1x8xf32>
    %c0_22 = arith.constant 0 : index
    %c0_23 = arith.constant 0 : index
    %21 = vector.load %arg14[%c0_22, %c0_23] : memref<1x8xi32, #tpu.memory_space<vmem>>, vector<1x8xi32>
    %22 = tpu.iota {dimensions = array<i32: 0>} : vector<16x8xi32>
    %23 = vector.broadcast %21 : vector<1x8xi32> to vector<16x8xi32>
    %24 = arith.cmpi eq, %22, %23 : vector<16x8xi32>
    %25 = arith.extui %24 : vector<16x8xi1> to vector<16x8xi32>
    %26 = arith.sitofp %25 : vector<16x8xi32> to vector<16x8xf32>
    %c0_24 = arith.constant 0 : index
    %c0_25 = arith.constant 0 : index
    %c0_26 = arith.constant 0 : index
    %27 = vector.load %arg3[%c0_24, %c0_25, %c0_26] : memref<1x8x16xf32, #tpu.memory_space<vmem>>, vector<1x8x16xf32>
    %28 = vector.shape_cast %27 : vector<1x8x16xf32> to vector<8x16xf32>
    %cst_27 = arith.constant dense<0.000000e+00> : vector<8x8xf32>
    %29 = tpu.matmul %28, %26, %cst_27 {dimension_numbers = #tpu.dot_dimension_numbers<[1], [0], [0], [1], [0, 0, 1, 1], [], []>} : vector<8x16xf32>, vector<16x8xf32>, vector<8x8xf32> -> vector<8x8xf32>
    %c0_28 = arith.constant 0 : index
    %c0_29 = arith.constant 0 : index
    %30 = vector.load %arg5[%c0_28, %c0_29] : memref<4x8xf32, #tpu.memory_space<vmem>>, vector<4x8xf32>
    %c0_30 = arith.constant 0 : index
    %c0_31 = arith.constant 0 : index
    %c0_32 = arith.constant 0 : index
    %31 = vector.load %arg4[%c0_30, %c0_31, %c0_32] : memref<1x4x1xf32, #tpu.memory_space<vmem>>, vector<1x4x1xf32>
    %32 = vector.shape_cast %31 : vector<1x4x1xf32> to vector<4x1xf32>
    %33 = vector.broadcast %32 : vector<4x1xf32> to vector<4x8xf32>
    %34 = arith.mulf %30, %33 : vector<4x8xf32>
    %cst_33 = arith.constant dense<0.000000e+00> : vector<4x8xf32>
    %35 = tpu.matmul %34, %29, %cst_33 {dimension_numbers = #tpu.dot_dimension_numbers<[1], [0], [0], [1], [0, 0, 1, 1], [], []>} : vector<4x8xf32>, vector<8x8xf32>, vector<4x8xf32> -> vector<4x8xf32>
    %36 = vector.shape_cast %20 : vector<1x8xf32> to vector<1x1x8xf32>
    %c0_34 = arith.constant 0 : index
    %c0_35 = arith.constant 0 : index
    %c0_36 = arith.constant 0 : index
    %37 = vector.load %arg6[%c0_34, %c0_35, %c0_36] : memref<1x1x8xf32, #tpu.memory_space<vmem>>, vector<1x1x8xf32>
    tpu.vector_store %arg6[%c0_34, %c0_35, %c0_36], %36 {strides = array<i32>} : memref<1x1x8xf32, #tpu.memory_space<vmem>>, vector<1x1x8xf32>,
    %38 = vector.extract_strided_slice %29 {offsets = [4, 0], sizes = [1, 8], strides = [1, 1]} : vector<8x8xf32> to vector<1x8xf32>
    %39 = vector.shape_cast %38 : vector<1x8xf32> to vector<1x1x8xf32>
    %c0_37 = arith.constant 0 : index
    %c0_38 = arith.constant 0 : index
    %c0_39 = arith.constant 0 : index
    %40 = vector.load %arg7[%c0_37, %c0_38, %c0_39] : memref<1x1x8xf32, #tpu.memory_space<vmem>>, vector<1x1x8xf32>
    tpu.vector_store %arg7[%c0_37, %c0_38, %c0_39], %39 {strides = array<i32>} : memref<1x1x8xf32, #tpu.memory_space<vmem>>, vector<1x1x8xf32>,
    %41 = vector.shape_cast %35 : vector<4x8xf32> to vector<1x4x8xf32>
    %c0_40 = arith.constant 0 : index
    %c0_41 = arith.constant 0 : index
    %c0_42 = arith.constant 0 : index
    %42 = vector.load %arg8[%c0_40, %c0_41, %c0_42] : memref<1x4x8xf32, #tpu.memory_space<vmem>>, vector<1x4x8xf32>
    tpu.vector_store %arg8[%c0_40, %c0_41, %c0_42], %41 {strides = array<i32>} : memref<1x4x8xf32, #tpu.memory_space<vmem>>, vector<1x4x8xf32>,
    %c0_43 = arith.constant 0 : index
    %c0_44 = arith.constant 0 : index
    %43 = vector.load %arg13[%c0_43, %c0_44] : memref<1x8xi32, #tpu.memory_space<vmem>>, vector<1x8xi32>
    %44 = vector.shape_cast %43 : vector<1x8xi32> to vector<1x1x8xi32>
    %c0_45 = arith.constant 0 : index
    %c0_46 = arith.constant 0 : index
    %c0_47 = arith.constant 0 : index
    %45 = vector.load %arg9[%c0_45, %c0_46, %c0_47] : memref<1x1x8xi32, #tpu.memory_space<vmem>>, vector<1x1x8xi32>
    tpu.vector_store %arg9[%c0_45, %c0_46, %c0_47], %44 {strides = array<i32>} : memref<1x1x8xi32, #tpu.memory_space<vmem>>, vector<1x1x8xi32>,
    return
  }
  func.func @transform_0(%arg0: i32) -> (i32, i32, i32) {
    %c0_i32 = arith.constant 0 : i32
    %c0_i32_0 = arith.constant 0 : i32
    %c0_i32_1 = arith.constant 0 : i32
    return %arg0, %c0_i32, %c0_i32_0 : i32, i32, i32
  }
  func.func @transform_1(%arg0: i32) -> (i32, i32) {
    %c0_i32 = arith.constant 0 : i32
    %c0_i32_0 = arith.constant 0 : i32
    %c0_i32_1 = arith.constant 0 : i32
    return %c0_i32, %c0_i32_0 : i32, i32
  }
  func.func @transform_2(%arg0: i32) -> (i32, i32, i32) {
    %c0_i32 = arith.constant 0 : i32
    %c0_i32_0 = arith.constant 0 : i32
    %c0_i32_1 = arith.constant 0 : i32
    return %arg0, %c0_i32, %c0_i32_0 : i32, i32, i32
  }
  func.func @transform_3(%arg0: i32) -> (i32, i32, i32) {
    %c0_i32 = arith.constant 0 : i32
    %c0_i32_0 = arith.constant 0 : i32
    %c0_i32_1 = arith.constant 0 : i32
    return %arg0, %c0_i32, %c0_i32_0 : i32, i32, i32
  }
  func.func @transform_4(%arg0: i32) -> (i32, i32) {
    %c0_i32 = arith.constant 0 : i32
    %c0_i32_0 = arith.constant 0 : i32
    %c0_i32_1 = arith.constant 0 : i32
    return %c0_i32, %c0_i32_0 : i32, i32
  }
  func.func @transform_5(%arg0: i32) -> (i32, i32, i32) {
    %c0_i32 = arith.constant 0 : i32
    %c0_i32_0 = arith.constant 0 : i32
    %c0_i32_1 = arith.constant 0 : i32
    return %arg0, %c0_i32, %c0_i32_0 : i32, i32, i32
  }
  func.func @transform_6(%arg0: i32) -> (i32, i32, i32) {
    %c0_i32 = arith.constant 0 : i32
    %c0_i32_0 = arith.constant 0 : i32
    %c0_i32_1 = arith.constant 0 : i32
    return %arg0, %c0_i32, %c0_i32_0 : i32, i32, i32
  }
  func.func @transform_7(%arg0: i32) -> (i32, i32, i32) {
    %c0_i32 = arith.constant 0 : i32
    %c0_i32_0 = arith.constant 0 : i32
    %c0_i32_1 = arith.constant 0 : i32
    return %arg0, %c0_i32, %c0_i32_0 : i32, i32, i32
  }
  func.func @transform_8(%arg0: i32) -> (i32, i32, i32) {
    %c0_i32 = arith.constant 0 : i32
    %c0_i32_0 = arith.constant 0 : i32
    %c0_i32_1 = arith.constant 0 : i32
    return %arg0, %c0_i32, %c0_i32_0 : i32, i32, i32
  }
}

</mosaic_0001>

<bundles_post_ra>
// kernel: tpu_custom_call.1
= control target key start
LH: loop header
LB: loop body
LE: loop exit
PB: predicated region body
PF: predicated region fallthrough
CT: control target
= control target key end

     0   :  { %s1551_s0 = inlined_call_operand.vmem [shape: f32[2,1,64], index: 0, kind: input, shape index: {}]   ;;  %s1552_s1 = inlined_call_operand.vmem [shape: s32[1,64], index: 1, kind: input, shape index: {}]   ;;  %s1553_s2 = inlined_call_operand.hbm [shape: f32[2,8,16], index: 2, kind: input, shape index: {}]   ;;  %s1554_s3 = inlined_call_operand.vmem [shape: f32[2,4,1], index: 3, kind: input, shape index: {}]   ;;  %s1555_s4 = inlined_call_operand.vmem [shape: f32[4,8], index: 4, kind: input, shape index: {}]   ;;  %s1556_s5 = inlined_call_operand.hbm [shape: f32[2,1,8], index: 5, kind: output, shape index: {0}]   ;;  %s1557_s6 = inlined_call_operand.hbm [shape: f32[2,1,8], index: 6, kind: output, shape index: {1}]   ;;  %s1558_s7 = inlined_call_operand.hbm [shape: f32[2,4,8], index: 7, kind: output, shape index: {2}]   ;;  %s1559_s8 = inlined_call_operand.hbm [shape: s32[2,1,8], index: 8, kind: output, shape index: {3}]  }
   0x1   :  { %1566 = sst [smem:[#allocation22_spill]] %s1551_s0 }
   0x2   :  { %1567 = sst [smem:[#allocation23_spill]] %s1553_s2 }
   0x3   :  { %14 = vsyncpa [#allocation8], 0 }
   0x4   :  { %16 = vsyncpa [#allocation8 + $0x1], 0 }
   0x5   :  { %17 = vsyncpa [#allocation9], 0 }
   0x6   :  { %19 = vsyncpa [#allocation9 + $0x1], 0 }
   0x7   :  { %20 = vsyncpa [#allocation12], 0 }
   0x8   :  { %22 = vsyncpa [#allocation12 + $0x1], 0 }
   0x9   :  { %23 = vsyncpa [#allocation15], 0 }
   0xa   :  { %25 = vsyncpa [#allocation15 + $0x1], 0  ;;  %s1238_s27 = smov 0   ;;  %s1240_s28 = smov 0  }
   0xb   :  { %s1242_s29 = smov 0   ;;  %s1244_s30 = smov 0  }
   0xc LB: > { %1568 = sst [smem:[#allocation20_spill]] %s1174_s29  ;;  %s1259_s9 = sadd.s32 4294967295, %s1178_s30   ;;  %s1178_s30 = sphi %s1244_s30, %s1592_s30   ;;  %s1174_s29 = sphi %s1242_s29, %s1589_s29   ;;  %s1170_s28 = sphi %s1240_s28, %s1591_s28   ;;  %s1166_s27 = sphi %s1238_s27, %s1590_s27  }
   0xd   : > { %s1560_s10 = sadd.s32 4294967294, %s1178_s30   ;;  %s1263_s11 = sadd.s32 1, %s1178_s30  }
   0xe   : > { %s85_s12 = sadd.s32 1, %s1174_s29  ;;  %s82_s13 = ssub.s32 %s1178_s30, %s1263_s11 }
   0xf   : > { %p92_p0 = scmp.ne.s32.totalorder %s1174_s29, %s1170_s28  ;;  %p83_p1 = scmp.eq.s32.totalorder %s82_s13, 0 }
  0x10   : > { %p93_p2 = scmp.eq.s32.totalorder %s1178_s30, 0  ;;  %p98_p3 = scmp.ne.s32.totalorder %s1170_s28, %s1166_s27 }
  0x11   : > { %p99_p4 = scmp.eq.s32.totalorder %s1259_s9, 0  ;;  %p169_p7 = scmp.eq.s32.totalorder %s1259_s9, 1 }
  0x12   : > { %s1275_s14 = scalar_select %p83_p1, %s1174_s29, %s85_s12  }
  0x13   : > { %p1277_p5 = por %p93_p2, %p92_p0  ;;  %p1281_p6 = por %p99_p4, %p98_p3 }
  0x14   : > { %1569 = sst [smem:[#allocation21_spill]] %s1275_s14  ;;  %p175_p8 = scmp.eq.s32.totalorder %s1560_s10, 1 }
  0x15   : > { %s1571_s16 = scalar_select %p1281_p6, 1, 0 }
  0x16   : > { %p945_p10 = scmp.lt.s32.totalorder %s1178_s30, 2  ;;  %p1290_p11 = por %p169_p7, %p92_p0 }
  0x17   : > { %p1294_p12 = por %p175_p8, %p98_p3  ;;  %s285_s19 = sand.u32 1, %s1174_s29  }
  0x18   : > { %s1572_s17 = scalar_select %p1290_p11, 1, 0 }
  0x19   : > { %s1573_s18 = scalar_select %p1294_p12, 1, 0 }
  0x1a   : > { %s881_s20 = sshll.u32 %s1178_s30, 7  ;;  %s880_s21 = sshll.u32 %s285_s19, 3 }
  0x1b   : > { %s1574_s2 = sld [smem:[#allocation23_spill]]  ;;  %s289_s25 = scalar_lea.vmem [#allocation7], %s880_s21 }
  0x1c   : > { %s296_s26 = sshll.u32 %s289_s25, 4  ;;  %p1307_p13 = pnand %p945_p10, %p1277_p5  ;;  %s1311_s26 = int_to_ptr.vmem [resolvable:$true] %s296_s26 }
  0x1d   : > { %s286_s13 = scalar_lea.sflag [#allocation8], %s285_s19 }
  0x1e   : > { %p998_p3 = pneg %p1307_p13 }
  0x21   : > { %s1303_s24 = scalar_lea.hbm %s1574_s2, %s881_s20  ;;  %s1001_s15 = scalar_lea.hbm %s1574_s2, 256 }
  0x22   : > { %s996_s10 = scalar_lea.hbm %s1303_s24, 128  ;;  %p1002_p5 = scmp.lt.s32.totalorder %s1303_s24, %s1574_s2 }
  0x23   : > { %p997_p2 = scmp.ne.s32.totalorder %s1303_s24, %s996_s10  ;;  %p1003_p8 = scmp.lt.s32.totalorder %s1001_s15, %s996_s10 }
  0x25   : > { %p999_p4 = pnand %p998_p3, %p997_p2  ;;  %p1004_p10 = por %p1003_p8, %p1002_p5 }
  0x27   : > { %p1000_p7 = pneg %p999_p4 }
  0x29   : > { %p1005_p9 = pnand %p1004_p10, %p1000_p7 }
  0x2b   : > { %1008 = shalt.err (!%p1005_p9)
}
  0x2c   : > { %s1009_s19 = scalar_lea.vmem %s1311_s26, 128  ;;  %s1184_s25 = smov [#allocation7]  }
  0x2d   : > { %p1010_p0 = scmp.ne.s32.totalorder %s1311_s26, %s1009_s19  ;;  %s1014_s14 = sshll.u32 %s1184_s25, 4  ;;  %s1015_s14 = int_to_ptr.vmem [resolvable:$false] %s1014_s14 }
  0x2e   : > { %s1016_s20 = scalar_lea.vmem %s1015_s14, 256  ;;  %p1017_p4 = scmp.lt.s32.totalorder %s1311_s26, %s1015_s14 }
  0x2f   : > { %p1012_p1 = pnand %p1010_p0, %p998_p3  ;;  %p1018_p12 = scmp.lt.s32.totalorder %s1016_s20, %s1009_s19 }
  0x31   : > { %p1013_p2 = pneg %p1012_p1  ;;  %p1019_p11 = por %p1018_p12, %p1017_p4 }
  0x33   : > { %p1020_p6 = pnand %p1019_p11, %p1013_p2 }
  0x35   : > { %1023 = shalt.err (!%p1020_p6)
}
  0x36   : > { %931 = dma.hbm_to_vmem [thread:$0]  (!%p1307_p13), %s1303_s24, 128, %s1311_s26, %s286_s13  }
  0x37   : > { %p1576_p9 = scmp.lt.s32.totalorder %s1178_s30, 3  ;;  %p1577_p7 = scmp.ge.s32.totalorder %s1178_s30, 1 }
  0x39   : > { %p309_p0 = pnand %p1577_p7, %p1576_p9 }
  0x3a   : > { %s1338_s10 = sand.u32 (!%p309_p0), 1, %s1170_s28   ;;  %p1578_p6 = scmp.ne.s32.totalorder (!%p309_p0), %s1571_s16, 0 }
  0x3b   : > { %312 = sbr.rel (%p309_p0) target bundleno = 926 (0x39e), region = 40  ;;  %s883_s14 = sshll.u32 (!%p309_p0), %s1338_s10, 3 }
  0x3c   : > { %s315_s21 = scalar_lea.sflag (!%p309_p0), [#allocation8], %s1338_s10  ;;  %s1342_s15 = scalar_lea.vmem (!%p309_p0), [#allocation7], %s883_s14 }
  0x40   : > { %1149 = dma.done.wait (%p1578_p6), %s315_s21, 128  }
  0x41   : > { %1151 = vsyncadd (%p1578_p6), %s315_s21, 4294967168  ;;  %vm378_vm0 = vcmask 516096   ;;  %vm381_vm1 = vcmask 57344   ;;  %v385_v0 = vlaneseq  ;;  %s884_s24 = sshll.u32 %s1338_s10, 2  ;;  %v1185_v1 = vmov 0   ;;  %p370_p11 = scmp.lt.s32.totalorder %s1259_s9, 1 }
  0x42   : > { %380 = vst.msk [vmem:[#allocation3] sm:$0x1] %vm378_vm0, %v1185_v1  ;;  %v1186_v2 = vmov 0.0   ;;  %s1579_s0 = sld [smem:[#allocation22_spill]]  ;;  %v1368_v4 = vld [vmem:[%s1552_s1] sm:$0x1] }
  0x43   : > { %383 = vst.msk [vmem:[#allocation5] sm:$0x1] %vm381_vm1, %v1185_v1  ;;  %384 = vst.msk [vmem:[#allocation6] sm:$0x1] %vm381_vm1, %v1185_v1  ;;  %v1359_v3 = vand.u32 127, %v385_v0  ;;  %s371_s16 = scalar_select %p370_p11, %s1259_s9, 1 }
  0x44   : > { %382 = vst.msk [vmem:[#allocation4] sm:$0x1] %vm381_vm1, %v1186_v2  ;;  %s1565_s21 = scalar_lea.vmem [#allocation10], %s1338_s10  ;;  %s356_s2 = scalar_lea.vmem [#allocation11], %s1338_s10 }
  0x45   : > { %s885_s22 = sshll.u32 %s371_s16, 2  ;;  %s1378_s29 = scalar_lea.vmem [#allocation13], %s884_s24 }
  0x46   : > { %s1373_s14 = scalar_lea.vmem %s1554_s3, %s885_s22  ;;  %s1564_s26 = scalar_lea.vmem [#allocation14], %s1338_s10 }
  0x47   : > { %s1381_s12 = smov 0  }
  0x48   : > { %s372_s13 = scalar_lea.vmem %s1579_s0, %s371_s16 }
  0x49   : > { %v377_v5 = vld [vmem:[%s372_s13] sm:$0x1] }
  0x4a   : > { %379 = vst.msk [vmem:[#allocation2] sm:$0x1] %vm378_vm0, %v377_v5 }
  0x4b LB: >> { %v395_v7 = vld [vmem:[#allocation3] sm:$0x1]  ;;  %v435_v10 = vstv %s1182_s12  ;;  %v437_v11 = vld [vmem:[#allocation4] sm:$0x1]  ;;  %v443_v39 = vld [vmem:[#allocation6] sm:$0x1]  ;;  %s1182_s12 = sphi %s1381_s12, %s393_s12  }
  0x4c   : >> { %vm396_vm2 = vcmp.eq.s32.totalorder %v395_v7, 0  ;;  %vm1389_vm3 = vcmp.eq.s32.totalorder %v1359_v3, %v435_v10  ;;  %v440_v40 = vld [vmem:[#allocation5] sm:$0x1]  ;;  %v447_v42 = vld [vmem:[#allocation3] sm:$0x1]  ;;  %s393_s12 = sadd.s32 1, %s1182_s12  }
  0x4d   : >> { %p390_p12 = scmp.ge.s32.totalorder %s393_s12, 8  }
  0x4e   : > { %906 = vmatprep.subr.mxu0 (%p390_p12), %v1186_v2  ;;  %v459_v47 = vshrl.u32 (%p390_p12), %v385_v0, 7  ;;  %991 = vset.pattern.permute.xlu0 (%p390_p12), %v1185_v1  ;;  %vm1187_vm9 = vmmov (%p390_p12), 0   ;;  %v547_v49 = vld [vmem:[%s1373_s14] sm:$0xf] (%p390_p12)  ;;  %v1188_v51 = vmov (%p390_p12), 1.0   ;;  %v471_v52 = vld [vmem:[%s1342_s15] sm:$0xff] (%p390_p12) }
  0x4f   : > { %910 = vmatprep.mubr.msk.f32.mxu0 (%p390_p12), %vm1187_vm9, %v1186_v2  ;;  %913 = vmatprep.subr.mxu1 (%p390_p12), %v1186_v2  ;;  %vm472_vm12 = vcmask (%p390_p12), 130048   ;;  %v546_v54 = vld [vmem:[%s1555_s4] sm:$0xf] (%p390_p12)  ;;  %vm629_vm13 = vcmask (%p390_p12), 61444   ;;  %vm554_vm14 = vcmask (%p390_p12), 64512   ;;  %s639_s15 = sand.u32 (%p390_p12), 1, %s1259_s9  }
  0x50   : > { %v460_v50 = vadd.s32 (%p390_p12), 8, %v459_v47  ;;  %915 = vmatprep.mubr.msk.f32.mxu1 (%p390_p12), %vm1187_vm9, %v1186_v2  ;;  %s1427_s13 = sshll.u32 (%p390_p12), %s1259_s9, 4  ;;  %s674_s25 = sshll.u32 (%p390_p12), %s356_s2, 4  ;;  %s675_s25 = int_to_ptr.vmem [resolvable:$true] %s674_s25 }
  0x51   : >> { %v394_v6 = vld [vmem:[#allocation2] sm:$0x1]  ;;  %s1433_s19 = scalar_lea.hbm (%p390_p12), %s1557_s6, %s1427_s13  ;;  %s1447_s12 = scalar_lea.hbm (%p390_p12), %s1556_s5, %s1427_s13 }
  0x52   : >> { %v397_v8 = vsel %vm396_vm2, %v394_v6, -inf  ;;  %s1449_s24 = scalar_lea.sflag (%p390_p12), [#allocation12], %s639_s15  ;;  %s1024_s16 = scalar_lea.vmem (%p390_p12), %s675_s25, 16 }
  0x53   : >> { %v398_v9 = vsel %vm378_vm0, %v397_v8, -inf  ;;  %p1025_p13 = scmp.ne.s32.totalorder (%p390_p12), %s675_s25, %s1024_s16  ;;  %p1582_p1 = scmp.ne.s32.totalorder (%p390_p12), %s1572_s17, 0 }
  0x54   : >> { %399 = vmax.xlane.f32.xlu0 %v398_v9 }
  0x55   : > { %p1026_p3 = pnand (%p390_p12), %p1025_p13, %p1582_p1 }
  0x57   : > { %p1027_p5 = pneg (%p390_p12), %p1026_p3 }
  0xdd   : >> { %v400_v13 = vpop.xlane.xlu0 %399 }
  0xde   : >> { %vm401_vm4 = vcmp.eq.f32.partialorder %v397_v8, %v400_v13  ;;  %v438_v14 = vsel %vm1389_vm3, %v400_v13, %v437_v11 }
  0xdf   : >> { %vm402_vm5 = vmand %vm401_vm4, %vm396_vm2  ;;  %439 = vst.msk [vmem:[#allocation4] sm:$0x1] %vm381_vm1, %v438_v14 }
  0xe0   : >> { %v419_v15 = vsel %vm402_vm5, %v1368_v4, 16  ;;  %v403_v16 = vsel %vm402_vm5, %v1359_v3, 64 }
  0xe1   : >> { %v420_v17 = vsel %vm378_vm0, %v419_v15, 2147483647  ;;  %v404_v18 = vsel %vm378_vm0, %v403_v16, 2147483647 }
  0xe2   : >> { %v422_v19 = vshra.s32 %v420_v17, 16  ;;  %v406_v20 = vshra.s32 %v404_v18, 16  ;;  %v421_v23 = vand.u32 65535, %v420_v17  ;;  %v405_v24 = vand.u32 65535, %v404_v18 }
  0xe4   : >> { %v424_v21 = vcvt.s32.f32 %v422_v19  ;;  %v408_v22 = vcvt.s32.f32 %v406_v20  ;;  %v423_v27 = vcvt.s32.f32 %v421_v23  ;;  %v407_v28 = vcvt.s32.f32 %v405_v24 }
  0xe6   : >> { %425 = vmin.xlane.f32.xlu1 %v424_v21  ;;  %409 = vmin.xlane.f32.xlu0 %v408_v22  ;;  %v450_v58 = vld [vmem:[#allocation4] sm:$0x1] (%p390_p12) }
  0xe7   : > { %v886_v59 = vmul.f32 (%p390_p12), -1.442695, %v450_v58 }
  0xe9   : > { %992 = vpow2.f32 (%p390_p12), %v886_v59 }
  0xf6   : > { %v993_v60 = vpop.eup (%p390_p12), %992 }
  0xf7   : > { %v454_v61 = vadd.f32 (%p390_p12), 1.0, %v993_v60 }
  0xf9   : > { %994 = vrcp.f32 (%p390_p12), %v454_v61 }
 0x106   : > { %v995_v62 = vpop.eup (%p390_p12), %994 }
 0x107   : > { %628 = vst.msk [vmem:[%s1565_s21] sm:$0x1] (%p390_p12), %vm381_vm1, %v995_v62 }
 0x16f   : >> { %v426_v25 = vpop.xlane.xlu1 %425  ;;  %v410_v26 = vpop.xlane.xlu0 %409 }
 0x170   : >> { %vm427_vm6 = vcmp.eq.f32.partialorder %v424_v21, %v426_v25  ;;  %vm411_vm7 = vcmp.eq.f32.partialorder %v408_v22, %v410_v26  ;;  %v432_v31 = vcvt.f32.s32 %v426_v25  ;;  %v416_v32 = vcvt.f32.s32 %v410_v26 }
 0x171   : >> { %v428_v29 = vsel %vm427_vm6, %v423_v27, inf  ;;  %v412_v30 = vsel %vm411_vm7, %v407_v28, inf }
 0x172   : >> { %429 = vmin.xlane.f32.xlu0 %v428_v29  ;;  %413 = vmin.xlane.f32.xlu1 %v412_v30  ;;  %v433_v35 = vshll.u32 %v432_v31, 16  ;;  %v417_v36 = vshll.u32 %v416_v32, 16 }
 0x188   : > { %550 = vperm.xlu0 (%p390_p12), %991, %v547_v49  }
 0x1fb   : >> { %v430_v33 = vpop.xlane.xlu0 %429  ;;  %v414_v34 = vpop.xlane.xlu1 %413 }
 0x1fc   : >> { %v431_v37 = vcvt.f32.s32 %v430_v33  ;;  %v415_v38 = vcvt.f32.s32 %v414_v34 }
 0x1fe   : >> { %v434_v41 = vadd.s32 %v433_v35, %v431_v37  ;;  %v418_v43 = vadd.s32 %v417_v36, %v415_v38  ;;  %392 = sbr.rel (!%p390_p12) target bundleno = 75 (0x4b), region = 147 }
 0x200   : >> { %v444_v44 = vsel %vm1389_vm3, %v434_v41, %v443_v39  ;;  %v441_v45 = vsel %vm1389_vm3, %v418_v43, %v440_v40  ;;  %vm446_vm8 = vcmp.eq.s32.totalorder %v1359_v3, %v418_v43 }
 0x201   : >> { %445 = vst.msk [vmem:[#allocation6] sm:$0x1] %vm381_vm1, %v444_v44  ;;  %442 = vst.msk [vmem:[#allocation5] sm:$0x1] %vm381_vm1, %v441_v45  ;;  %v448_v46 = vsel %vm446_vm8, 1, %v447_v42 }
 0x202   : >> { %449 = vst.msk [vmem:[#allocation3] sm:$0x1] %vm378_vm0, %v448_v46 }
 0x203   : > { %v551_v53 = vpop.permute.xlu0 %550 }
 0x204   : > { %v553_v55 = vmul.f32 %v551_v53, %v546_v54 }
 0x208   : > { %v887_v48 = vld [vmem:[#allocation6] ss:$0 sm:$0xff]  ;;  %v633_v63 = vld [vmem:[#allocation5] sm:$0x1] }
 0x209   : > { %vm466_vm10 = vcmp.eq.s32.totalorder %v460_v50, %v887_v48  ;;  %vm465_vm11 = vcmp.eq.s32.totalorder %v459_v47, %v887_v48  ;;  %634 = vst.msk [vmem:[%s1564_s26] sm:$0x1] %vm381_vm1, %v633_v63 }
 0x20a   : > { %907 = vmatpush3.msk.msra.mxu0 %vm466_vm10, %v1188_v51 }
 0x20b   : > { %908 = vmatprep.subr.mxu0 %v1186_v2 }
 0x20c   : > { %909 = vmatpush3.msk.msra.mxu0 %vm465_vm11, %v1188_v51 }
 0x20d   : > { %911 = vmatmul.mubr.msk.f32.vlgmr.msra.gmra.mxu0 %vm472_vm12, %v471_v52 }
 0x2cd   : > { %v542_v56 = vpop.f32.mrf.mxu0 }
 0x2ce   : > { %630 = vst.msk [vmem:[%s356_s2 - $0x4] sm:$0x10] %vm629_vm13, %v542_v56  ;;  %914 = vmatpush3.msra.mxu1 %v542_v56  ;;  %s1189_s2 = smov [#allocation11]  }
 0x2cf   : > { %v912_v57 = vpop.f32.mrf.mxu0  ;;  %916 = vmatmul.mubr.msk.f32.vlgmr.msra.gmra.mxu1 %vm554_vm14, %v553_v55  ;;  %s1028_s22 = sshll.u32 %s1189_s2, 4  ;;  %s1029_s22 = int_to_ptr.vmem [resolvable:$false] %s1028_s22 }
 0x2d0   : > { %s1030_s23 = scalar_lea.vmem %s1029_s22, 32  ;;  %p1031_p8 = scmp.lt.s32.totalorder %s675_s25, %s1029_s22 }
 0x2d1   : > { %p1032_p10 = scmp.lt.s32.totalorder %s1030_s23, %s1024_s16 }
 0x2d3   : > { %p1033_p2 = por %p1032_p10, %p1031_p8 }
 0x2d5   : > { %p1034_p4 = pnand %p1033_p2, %p1027_p5 }
 0x2d7   : > { %1037 = shalt.err (!%p1034_p4)
}
 0x2d8   : > { %s1038_s15 = scalar_lea.hbm %s1433_s19, 16  ;;  %s1042_s2 = scalar_lea.hbm %s1557_s6, 32 }
 0x2d9   : > { %p1039_p9 = scmp.ne.s32.totalorder %s1433_s19, %s1038_s15  ;;  %p1043_p6 = scmp.lt.s32.totalorder %s1433_s19, %s1557_s6 }
 0x2da   : > { %p1044_p11 = scmp.lt.s32.totalorder %s1042_s2, %s1038_s15 }
 0x2db   : > { %p1040_p7 = pnand %p1039_p9, %p1582_p1 }
 0x2dc   : > { %p1045_p12 = por %p1044_p11, %p1043_p6 }
 0x2dd   : > { %p1041_p0 = pneg %p1040_p7 }
 0x2df   : > { %p1046_p13 = pnand %p1045_p12, %p1041_p0 }
 0x2e1   : > { %1049 = shalt.err (!%p1046_p13)
}
 0x2e2   : > { %921 = dma.vmem_to_hbm [thread:$0]  (%p1582_p1), %s675_s25, 16, %s1433_s19, %s1449_s24  }
 0x2e3   : > { %s1583_s16 = scalar_lea.vmem [#allocation10], %s1338_s10  ;;  %s636_s23 = scalar_lea.sflag [#allocation9], %s1338_s10 }
 0x2e4   : > { %s661_s22 = sshll.u32 %s1583_s16, 4  ;;  %s1190_s21 = smov [#allocation10]   ;;  %s662_s22 = int_to_ptr.vmem [resolvable:$true] %s661_s22 }
 0x2e5   : > { %s1050_s20 = scalar_lea.vmem %s662_s22, 16  ;;  %s1054_s26 = sshll.u32 %s1190_s21, 4  ;;  %s1055_s26 = int_to_ptr.vmem [resolvable:$false] %s1054_s26 }
 0x2e6   : > { %p1051_p3 = scmp.ne.s32.totalorder %s662_s22, %s1050_s20  ;;  %s1056_s15 = scalar_lea.vmem %s1055_s26, 32 }
 0x2e7   : > { %p1057_p10 = scmp.lt.s32.totalorder %s662_s22, %s1055_s26  ;;  %p1058_p2 = scmp.lt.s32.totalorder %s1056_s15, %s1050_s20 }
 0x2e8   : > { %p1052_p5 = pnand %p1051_p3, %p1582_p1 }
 0x2e9   : > { %p1059_p4 = por %p1058_p2, %p1057_p10 }
 0x2ea   : > { %p1053_p8 = pneg %p1052_p5 }
 0x2ec   : > { %p1060_p9 = pnand %p1059_p4, %p1053_p8 }
 0x2ee   : > { %1063 = shalt.err (!%p1060_p9)
}
 0x2ef   : > { %s1064_s19 = scalar_lea.hbm %s1447_s12, 16  ;;  %s1068_s2 = scalar_lea.hbm %s1556_s5, 32 }
 0x2f0   : > { %p1065_p7 = scmp.ne.s32.totalorder %s1447_s12, %s1064_s19  ;;  %p1069_p11 = scmp.lt.s32.totalorder %s1447_s12, %s1556_s5 }
 0x2f1   : > { %p1070_p12 = scmp.lt.s32.totalorder %s1068_s2, %s1064_s19 }
 0x2f2   : > { %p1066_p0 = pnand %p1065_p7, %p1582_p1 }
 0x2f3   : > { %p1071_p13 = por %p1070_p12, %p1069_p11 }
 0x2f4   : > { %p1067_p6 = pneg %p1066_p0 }
 0x2f6   : > { %p1072_p3 = pnand %p1071_p13, %p1067_p6 }
 0x2f8   : > { %1075 = shalt.err (!%p1072_p3)
}
 0x2f9   : > { %920 = dma.vmem_to_hbm [thread:$0]  (%p1582_p1), %s662_s22, 16, %s1447_s12, %s636_s23  }
 0x2fa   : > { %s698_s15 = scalar_lea.hbm %s1559_s8, %s1427_s13  ;;  %s1584_s25 = scalar_lea.vmem [#allocation14], %s1338_s10 }
 0x2fb   : > { %s700_s14 = sshll.u32 %s1584_s25, 4  ;;  %s649_s16 = scalar_lea.sflag [#allocation15], %s1338_s10  ;;  %s701_s14 = int_to_ptr.vmem [resolvable:$true] %s700_s14 }
 0x2fc   : > { %s1076_s19 = scalar_lea.vmem %s701_s14, 16  ;;  %s1191_s2 = smov [#allocation14]  }
 0x2fd   : > { %p1077_p5 = scmp.ne.s32.totalorder %s701_s14, %s1076_s19  ;;  %s1080_s21 = sshll.u32 %s1191_s2, 4  ;;  %s1081_s21 = int_to_ptr.vmem [resolvable:$false] %s1080_s21 }
 0x2fe   : > { %s1082_s0 = scalar_lea.vmem %s1081_s21, 32  ;;  %p1083_p2 = scmp.lt.s32.totalorder %s701_s14, %s1081_s21 }
 0x2ff   : > { %p1078_p8 = pnand %p1077_p5, %p1582_p1  ;;  %p1084_p4 = scmp.lt.s32.totalorder %s1082_s0, %s1076_s19 }
 0x301   : > { %p1079_p10 = pneg %p1078_p8  ;;  %p1085_p9 = por %p1084_p4, %p1083_p2 }
 0x303   : > { %p1086_p7 = pnand %p1085_p9, %p1079_p10 }
 0x305   : > { %1089 = shalt.err (!%p1086_p7)
}
 0x306   : > { %s1090_s12 = scalar_lea.hbm %s698_s15, 16  ;;  %s1094_s22 = scalar_lea.hbm %s1559_s8, 32 }
 0x307   : > { %p1091_p0 = scmp.ne.s32.totalorder %s698_s15, %s1090_s12  ;;  %p1095_p12 = scmp.lt.s32.totalorder %s698_s15, %s1559_s8 }
 0x308   : > { %p1096_p13 = scmp.lt.s32.totalorder %s1094_s22, %s1090_s12 }
 0x309   : > { %p1092_p6 = pnand %p1091_p0, %p1582_p1 }
 0x30a   : > { %p1097_p3 = por %p1096_p13, %p1095_p12 }
 0x30b   : > { %p1093_p11 = pneg %p1092_p6 }
 0x30d   : > { %p1098_p5 = pnand %p1097_p3, %p1093_p11 }
 0x30f   : > { %1101 = shalt.err (!%p1098_p5)
}
 0x310   : > { %923 = dma.vmem_to_hbm [thread:$0]  (%p1582_p1), %s701_s14, 16, %s698_s15, %s649_s16   ;;  %vm631_vm15 = vcmask 60416  }
 0x311   : > { %s897_s0 = sshll.u32 %s1259_s9, 6  ;;  %s687_s26 = sshll.u32 %s1378_s29, 4  ;;  %s688_s26 = int_to_ptr.vmem [resolvable:$true] %s687_s26 }
 0x312   : > { %s1511_s2 = scalar_lea.hbm %s1558_s7, %s897_s0  ;;  %s1102_s21 = scalar_lea.vmem %s688_s26, 64 }
 0x313   : > { %p1103_p8 = scmp.ne.s32.totalorder %s688_s26, %s1102_s21  ;;  %s1192_s12 = smov [#allocation13]  }
 0x314   : > { %s1106_s10 = sshll.u32 %s1192_s12, 4  ;;  %s1107_s10 = int_to_ptr.vmem [resolvable:$false] %s1106_s10 }
 0x315   : > { %p1104_p10 = pnand %p1103_p8, %p1582_p1  ;;  %s1108_s9 = scalar_lea.vmem %s1107_s10, 128 }
 0x316   : > { %p1109_p4 = scmp.lt.s32.totalorder %s688_s26, %s1107_s10  ;;  %p1110_p9 = scmp.lt.s32.totalorder %s1108_s9, %s1102_s21 }
 0x317   : > { %p1105_p2 = pneg %p1104_p10 }
 0x318   : > { %p1111_p7 = por %p1110_p9, %p1109_p4 }
 0x31a   : > { %p1112_p0 = pnand %p1111_p7, %p1105_p2 }
 0x38f   : > { %v624_v0 = vpop.f32.mrf.mxu1 }
 0x390   : > { %632 = vst.msk [vmem:[%s1378_s29] sm:$0xf] %vm631_vm15, %v624_v0 }
 0x391   : > { %v917_v1 = vpop.f32.mrf.mxu1 }
 0x392   : > { %1115 = shalt.err (!%p1112_p0)
}
 0x393   : > { %s1116_s29 = scalar_lea.hbm %s1511_s2, 64  ;;  %s1120_s16 = scalar_lea.hbm %s1558_s7, 128 }
 0x394   : > { %p1117_p6 = scmp.ne.s32.totalorder %s1511_s2, %s1116_s29  ;;  %p1121_p13 = scmp.lt.s32.totalorder %s1511_s2, %s1558_s7 }
 0x395   : > { %p1122_p3 = scmp.lt.s32.totalorder %s1120_s16, %s1116_s29 }
 0x396   : > { %p1118_p11 = pnand %p1117_p6, %p1582_p1 }
 0x397   : > { %p1123_p5 = por %p1122_p3, %p1121_p13 }
 0x398   : > { %p1119_p12 = pneg %p1118_p11 }
 0x39a   : > { %p1124_p8 = pnand %p1123_p5, %p1119_p12 }
 0x39c   : > { %1127 = shalt.err (!%p1124_p8)
}
 0x39d   : > { %922 = dma.vmem_to_hbm [thread:$0]  (%p1582_p1), %s688_s26, 64, %s1511_s2, %s1449_s24  }
 0x39e PF: > { %s712_s23 = sand.u32 1, %s1166_s27   ;;  %p1585_p10 = scmp.ne.s32.totalorder %s1573_s18, 0 }
 0x39f   : > { %p1586_p2 = scmp.ge.s32.totalorder %s1178_s30, 2  ;;  %s713_s20 = scalar_lea.sflag [#allocation9], %s712_s23 }
 0x3a1   : > { %p933_p4 = pnand %p1586_p2, %p1585_p10 }
 0x3a3   : > { %p934_p9 = pneg %p933_p4 }
 0x3a5   : > { %1153 = dma.done.wait (%p934_p9), %s713_s20, 16  }
 0x3a6   : > { %1155 = vsyncadd (%p934_p9), %s713_s20, 4294967280  ;;  %s1587_s0 = sadd.s32 4294967294, %s1178_s30  }
 0x3a7   : > { %s720_s25 = sand.u32 1, %s1587_s0  }
 0x3a8   : > { %s721_s19 = scalar_lea.sflag [#allocation12], %s720_s25 }
 0x3a9   : > { %1157 = dma.done.wait (%p934_p9), %s721_s19, 80  }
 0x3aa   : > { %1159 = vsyncadd (%p934_p9), %s721_s19, 4294967216  ;;  %s738_s17 = scalar_lea.sflag [#allocation15], %s712_s23 }
 0x3ab   : > { %1161 = dma.done.wait (%p934_p9), %s738_s17, 16  }
 0x3ac   : > { %1163 = vsyncadd (%p934_p9), %s738_s17, 4294967280  ;;  %s1588_s24 = sld [smem:[#allocation20_spill]]  ;;  %p28_p1 = scmp.ge.s32.totalorder %s1263_s11, 4  }
 0x3ad   : > { %s1589_s29 = sld [smem:[#allocation21_spill]]  ;;  %s1590_s27 = smov %s1170_s28 }
 0x3ae   : > { %s1592_s30 = smov %s1263_s11  ;;  %30 = sbr.rel (!%p28_p1) target bundleno = 12 (0xc), region = 158 }
 0x3b2   : > { %s1591_s28 = smov %s1588_s24 }
 0x3b3   :  { %742 = vsyncpa [#allocation8], 1 }
 0x3b4   :  { %744 = vsyncpa [#allocation8 + $0x1], 1 }
 0x3b5   :  { %745 = vsyncpa [#allocation9], 1 }
 0x3b6   :  { %747 = vsyncpa [#allocation9 + $0x1], 1 }
 0x3b7   :  { %748 = vsyncpa [#allocation12], 1 }
 0x3b8   :  { %750 = vsyncpa [#allocation12 + $0x1], 1 }
 0x3b9   :  { %751 = vsyncpa [#allocation15], 1 }
 0x3ba   :  { %753 = vsyncpa [#allocation15 + $0x1], 1 }

</bundles_post_ra>
